<compile_context>
chip_gen: v7x
topology: tpu7x:2x2x1
jax: 0.10.0
libtpu: 0.0.40
codegen_flags: <defaults>
</compile_context>

<pallas_src>
import functools

import jax
import jax.numpy as jnp
from jax.experimental import pallas as pl
from jax.experimental.pallas import tpu as pltpu

HIDDEN = 128  # fixed by the module (lin1/lin2 -> 128)


def _round_up(n, m):
    return ((n + m - 1) // m) * m


def _softplus(x):
    # torch.nn.functional.softplus (beta=1, threshold=20) forward semantics:
    # x for x > 20, else log1p(exp(x)).  exp overflow in the discarded branch
    # saturates to inf (not NaN), so no clamp is needed for the forward pass.
    return jnp.where(x > 20.0, x, jnp.log1p(jnp.exp(x)))


def jem_kernel(x_ref, w1_ref, b1_ref, w2_ref, b2_ref, w3_ref, b3_ref, o_ref):
    # x_ref:  (TB, D)  f32        w1: (D, 128)   bf16   b1: (1, 128) f32
    # w2: (128, 128) bf16         b2: (1, 128)   f32
    # w3: (128, C)   bf16         b3: (1, C)     f32    o_ref: (TB, C) f32
    x = x_ref[...].astype(jnp.bfloat16)
    h = jnp.dot(x, w1_ref[...], preferred_element_type=jnp.float32) + b1_ref[...]
    h = _softplus(h).astype(jnp.bfloat16)
    h = jnp.dot(h, w2_ref[...], preferred_element_type=jnp.float32) + b2_ref[...]
    h = _softplus(h).astype(jnp.bfloat16)
    out = jnp.dot(h, w3_ref[...], preferred_element_type=jnp.float32) + b3_ref[...]
    o_ref[...] = out.astype(o_ref.dtype)


def prepare_params(params):
    """One-time weight prep (hoisted out of the per-call path): bf16 matmul
    weights, f32 biases."""
    w1, b1, w2, b2, w3, b3 = params
    return (w1.astype(jnp.bfloat16), b1,
            w2.astype(jnp.bfloat16), b2,
            w3.astype(jnp.bfloat16), b3)


@functools.partial(jax.jit, static_argnames=("block_b",))
def jem_forward(x, prepped_params, block_b=4096):
    """Pallas implementation of jemModel.forward(x, s) (s unused by the module).

    On v7x, pass block_b=8192 (HBM is ~2.3x faster, so larger tiles are needed
    to amortize the fixed ~0.35 us per-grid-step overhead).
    """
    w1, b1, w2, b2, w3, b3 = prepped_params
    B, D = x.shape
    C = w3.shape[1]

    # Batch tile: as large as possible for pipeline efficiency, but capped so
    # the grid has >= 2 blocks when B > 16 (keeps both v7x TCs busy).  Multiple
    # of 16 for bf16 sublane packing.
    bb = min(block_b, _round_up(pl.cdiv(B, 2), 16))
    bb = max(16, _round_up(bb, 16))
    grid = (pl.cdiv(B, bb),)

    out = pl.pallas_call(
        jem_kernel,
        out_shape=jax.ShapeDtypeStruct((B, C), jnp.float32),
        grid_spec=pltpu.PrefetchScalarGridSpec(
            num_scalar_prefetch=0,
            grid=grid,
            in_specs=[
                pl.BlockSpec((bb, D), lambda i: (i, 0)),           # x tile over batch (full D)
                pl.BlockSpec((D, HIDDEN), lambda i: (0, 0)),       # w1 (full, grid-invariant)
                pl.BlockSpec((1, HIDDEN), lambda i: (0, 0)),       # b1
                pl.BlockSpec((HIDDEN, HIDDEN), lambda i: (0, 0)),  # w2
                pl.BlockSpec((1, HIDDEN), lambda i: (0, 0)),       # b2
                pl.BlockSpec((HIDDEN, C), lambda i: (0, 0)),       # w3 (full C)
                pl.BlockSpec((1, C), lambda i: (0, 0)),            # b3 (full C)
            ],
            out_specs=pl.BlockSpec((bb, C), lambda i: (i, 0)),     # unpadded output
        ),
        compiler_params=pltpu.CompilerParams(
            dimension_semantics=("parallel",),
            vmem_limit_bytes=48 * 1024 * 1024,
        ),
    )(x, w1, b1, w2, b2, w3, b3)

    return out


def init_params(key, input_dim, data_classes):
    """Deterministic synthetic parameters (PyTorch nn.Linear-style uniform init)."""
    def linear(k, fan_in, fan_out):
        kw, kb = jax.random.split(k)
        bound = 1.0 / jnp.sqrt(fan_in)
        # stored as (in, out) == W_pt.T
        w = jax.random.uniform(kw, (fan_in, fan_out), jnp.float32, -bound, bound)
        b = jax.random.uniform(kb, (1, fan_out), jnp.float32, -bound, bound)
        return w, b

    k1, k2, k3 = jax.random.split(key, 3)
    w1, b1 = linear(k1, input_dim, HIDDEN)
    w2, b2 = linear(k2, HIDDEN, HIDDEN)
    w3, b3 = linear(k3, HIDDEN, data_classes)
    return (w1, b1, w2, b2, w3, b3)


def jem_forward_ref(x, params):
    """Pure-JAX f32 reference for correctness checking."""
    w1, b1, w2, b2, w3, b3 = params
    h = jax.nn.softplus(x @ w1 + b1)
    h = jax.nn.softplus(h @ w2 + b2)
    return h @ w3 + b3


if __name__ == "__main__":
    input_dim = 32
    data_classes = 16
    batch = 256  # -> bb = 128, grid = 2 (both v7x TCs get a block)

    key = jax.random.PRNGKey(0)
    kx, kp, ks = jax.random.split(key, 3)

    x = jax.random.normal(kx, (batch, input_dim), jnp.float32)
    s = jax.random.randint(ks, (batch,), 0, data_classes)  # unused (matches PyTorch)
    params = init_params(kp, input_dim, data_classes)
    prepped = prepare_params(params)  # one-time bf16 weight prep

    out = jem_forward(x, prepped)
    out = jax.block_until_ready(out)

    ref = jem_forward_ref(x, params)
    assert out.shape == (batch, data_classes)
    # bf16 matmul inputs with f32 accumulation -> ~1% relative error budget.
    assert jnp.allclose(out, ref, atol=5e-2, rtol=5e-2), "mismatch vs reference"

    print("KERNEL_OK")
</pallas_src>

<mosaic_0001>
module attributes {stable_mosaic.version = 11 : i64} {
  func.func @jem_kernel(%arg0: i32, %arg1: memref<128x32xf32, #tpu.memory_space<vmem>>, %arg2: memref<32x128xbf16, #tpu.memory_space<vmem>>, %arg3: memref<1x128xf32, #tpu.memory_space<vmem>>, %arg4: memref<128x128xbf16, #tpu.memory_space<vmem>>, %arg5: memref<1x128xf32, #tpu.memory_space<vmem>>, %arg6: memref<128x16xbf16, #tpu.memory_space<vmem>>, %arg7: memref<1x16xf32, #tpu.memory_space<vmem>>, %arg8: memref<128x16xf32, #tpu.memory_space<vmem>>) attributes {dimension_semantics = [#tpu.dimension_semantics<parallel>], iteration_bounds = array<i64: 2>, scalar_prefetch = 0 : i64, scratch_operands = 0 : i64, tpu.core_type = #tpu.core_type<tc>, window_params = [{transform_indices = @transform_0, window_bounds = array<i64: 128, 32>}, {pipeline_mode = #tpu.pipeline_mode<synchronous>, transform_indices = @transform_1, window_bounds = array<i64: 32, 128>}, {pipeline_mode = #tpu.pipeline_mode<synchronous>, transform_indices = @transform_2, window_bounds = array<i64: 1, 128>}, {pipeline_mode = #tpu.pipeline_mode<synchronous>, transform_indices = @transform_3, window_bounds = array<i64: 128, 128>}, {pipeline_mode = #tpu.pipeline_mode<synchronous>, transform_indices = @transform_4, window_bounds = array<i64: 1, 128>}, {pipeline_mode = #tpu.pipeline_mode<synchronous>, transform_indices = @transform_5, window_bounds = array<i64: 128, 16>}, {pipeline_mode = #tpu.pipeline_mode<synchronous>, transform_indices = @transform_6, window_bounds = array<i64: 1, 16>}, {transform_indices = @transform_7, window_bounds = array<i64: 128, 16>}]} {
    %c0 = arith.constant 0 : index
    %c0_0 = arith.constant 0 : index
    %0 = vector.load %arg1[%c0, %c0_0] : memref<128x32xf32, #tpu.memory_space<vmem>>, vector<128x32xf32>
    %1 = arith.truncf %0 : vector<128x32xf32> to vector<128x32xbf16>
    %c0_1 = arith.constant 0 : index
    %c0_2 = arith.constant 0 : index
    %2 = vector.load %arg2[%c0_1, %c0_2] : memref<32x128xbf16, #tpu.memory_space<vmem>>, vector<32x128xbf16>
    %cst = arith.constant dense<0.000000e+00> : vector<128x128xf32>
    %3 = tpu.matmul %1, %2, %cst {dimension_numbers = #tpu.dot_dimension_numbers<[1], [0], [0], [1], [0, 0, 1, 1], [], []>} : vector<128x32xbf16>, vector<32x128xbf16>, vector<128x128xf32> -> vector<128x128xf32>
    %c0_3 = arith.constant 0 : index
    %c0_4 = arith.constant 0 : index
    %4 = vector.load %arg3[%c0_3, %c0_4] : memref<1x128xf32, #tpu.memory_space<vmem>>, vector<1x128xf32>
    %5 = vector.broadcast %4 : vector<1x128xf32> to vector<128x128xf32>
    %6 = arith.addf %3, %5 : vector<128x128xf32>
    %cst_5 = arith.constant 2.000000e+01 : f32
    %7 = vector.broadcast %cst_5 : f32 to vector<128x128xf32>
    %8 = arith.cmpf ogt, %6, %7 : vector<128x128xf32>
    %9 = math.exp %6 : vector<128x128xf32>
    %10 = math.log1p %9 : vector<128x128xf32>
    %11 = arith.select %8, %6, %10 : vector<128x128xi1>, vector<128x128xf32>
    %12 = arith.truncf %11 : vector<128x128xf32> to vector<128x128xbf16>
    %c0_6 = arith.constant 0 : index
    %c0_7 = arith.constant 0 : index
    %13 = vector.load %arg4[%c0_6, %c0_7] : memref<128x128xbf16, #tpu.memory_space<vmem>>, vector<128x128xbf16>
    %cst_8 = arith.constant dense<0.000000e+00> : vector<128x128xf32>
    %14 = tpu.matmul %12, %13, %cst_8 {dimension_numbers = #tpu.dot_dimension_numbers<[1], [0], [0], [1], [0, 0, 1, 1], [], []>} : vector<128x128xbf16>, vector<128x128xbf16>, vector<128x128xf32> -> vector<128x128xf32>
    %c0_9 = arith.constant 0 : index
    %c0_10 = arith.constant 0 : index
    %15 = vector.load %arg5[%c0_9, %c0_10] : memref<1x128xf32, #tpu.memory_space<vmem>>, vector<1x128xf32>
    %16 = vector.broadcast %15 : vector<1x128xf32> to vector<128x128xf32>
    %17 = arith.addf %14, %16 : vector<128x128xf32>
    %cst_11 = arith.constant 2.000000e+01 : f32
    %18 = vector.broadcast %cst_11 : f32 to vector<128x128xf32>
    %19 = arith.cmpf ogt, %17, %18 : vector<128x128xf32>
    %20 = math.exp %17 : vector<128x128xf32>
    %21 = math.log1p %20 : vector<128x128xf32>
    %22 = arith.select %19, %17, %21 : vector<128x128xi1>, vector<128x128xf32>
    %23 = arith.truncf %22 : vector<128x128xf32> to vector<128x128xbf16>
    %c0_12 = arith.constant 0 : index
    %c0_13 = arith.constant 0 : index
    %24 = vector.load %arg6[%c0_12, %c0_13] : memref<128x16xbf16, #tpu.memory_space<vmem>>, vector<128x16xbf16>
    %cst_14 = arith.constant dense<0.000000e+00> : vector<128x16xf32>
    %25 = tpu.matmul %23, %24, %cst_14 {dimension_numbers = #tpu.dot_dimension_numbers<[1], [0], [0], [1], [0, 0, 1, 1], [], []>} : vector<128x128xbf16>, vector<128x16xbf16>, vector<128x16xf32> -> vector<128x16xf32>
    %c0_15 = arith.constant 0 : index
    %c0_16 = arith.constant 0 : index
    %26 = vector.load %arg7[%c0_15, %c0_16] : memref<1x16xf32, #tpu.memory_space<vmem>>, vector<1x16xf32>
    %27 = vector.broadcast %26 : vector<1x16xf32> to vector<128x16xf32>
    %28 = arith.addf %25, %27 : vector<128x16xf32>
    %c0_17 = arith.constant 0 : index
    %c0_18 = arith.constant 0 : index
    %29 = vector.load %arg8[%c0_17, %c0_18] : memref<128x16xf32, #tpu.memory_space<vmem>>, vector<128x16xf32>
    tpu.vector_store %arg8[%c0_17, %c0_18], %28 {strides = array<i32>} : memref<128x16xf32, #tpu.memory_space<vmem>>, vector<128x16xf32>,
    return
  }
  func.func @transform_0(%arg0: i32) -> (i32, i32) {
    %c0_i32 = arith.constant 0 : i32
    %c0_i32_0 = arith.constant 0 : i32
    return %arg0, %c0_i32 : i32, i32
  }
  func.func @transform_1(%arg0: i32) -> (i32, i32) {
    %c0_i32 = arith.constant 0 : i32
    %c0_i32_0 = arith.constant 0 : i32
    %c0_i32_1 = arith.constant 0 : i32
    return %c0_i32, %c0_i32_0 : i32, i32
  }
  func.func @transform_2(%arg0: i32) -> (i32, i32) {
    %c0_i32 = arith.constant 0 : i32
    %c0_i32_0 = arith.constant 0 : i32
    %c0_i32_1 = arith.constant 0 : i32
    return %c0_i32, %c0_i32_0 : i32, i32
  }
  func.func @transform_3(%arg0: i32) -> (i32, i32) {
    %c0_i32 = arith.constant 0 : i32
    %c0_i32_0 = arith.constant 0 : i32
    %c0_i32_1 = arith.constant 0 : i32
    return %c0_i32, %c0_i32_0 : i32, i32
  }
  func.func @transform_4(%arg0: i32) -> (i32, i32) {
    %c0_i32 = arith.constant 0 : i32
    %c0_i32_0 = arith.constant 0 : i32
    %c0_i32_1 = arith.constant 0 : i32
    return %c0_i32, %c0_i32_0 : i32, i32
  }
  func.func @transform_5(%arg0: i32) -> (i32, i32) {
    %c0_i32 = arith.constant 0 : i32
    %c0_i32_0 = arith.constant 0 : i32
    %c0_i32_1 = arith.constant 0 : i32
    return %c0_i32, %c0_i32_0 : i32, i32
  }
  func.func @transform_6(%arg0: i32) -> (i32, i32) {
    %c0_i32 = arith.constant 0 : i32
    %c0_i32_0 = arith.constant 0 : i32
    %c0_i32_1 = arith.constant 0 : i32
    return %c0_i32, %c0_i32_0 : i32, i32
  }
  func.func @transform_7(%arg0: i32) -> (i32, i32) {
    %c0_i32 = arith.constant 0 : i32
    %c0_i32_0 = arith.constant 0 : i32
    return %arg0, %c0_i32 : i32, i32
  }
}

</mosaic_0001>

<bundles_post_ra>
// kernel: jem_forward.1
= control target key start
LH: loop header
LB: loop body
LE: loop exit
PB: predicated region body
PF: predicated region fallthrough
CT: control target
= control target key end

     0   :  { %s1661_s24 = smov 0   ;;  %s2344_s0 = inlined_call_operand.vmem [shape: f32[256,32], index: 0, kind: input, shape index: {}]   ;;  %s2345_s1 = inlined_call_operand.vmem [shape: bf16[32,128], index: 1, kind: input, shape index: {}]   ;;  %s2346_s2 = inlined_call_operand.vmem [shape: f32[1,128], index: 2, kind: input, shape index: {}]   ;;  %s2347_s3 = inlined_call_operand.vmem [shape: bf16[128,128], index: 3, kind: input, shape index: {}]   ;;  %s2348_s4 = inlined_call_operand.vmem [shape: f32[1,128], index: 4, kind: input, shape index: {}]   ;;  %s2349_s5 = inlined_call_operand.vmem [shape: bf16[128,16], index: 5, kind: input, shape index: {}]   ;;  %s2350_s6 = inlined_call_operand.vmem [shape: f32[1,16], index: 6, kind: input, shape index: {}]   ;;  %s2351_s7 = inlined_call_operand.vmem [shape: f32[256,16], index: 7, kind: output, shape index: {}]  }
   0x1 LB: > { %s1293_s25 = sadd.s32 4294967295, %s1619_s24   ;;  %p1297_p0 = scmp.ge.s32.totalorder %s1619_s24, 1  ;;  %s1619_s24 = sphi %s1661_s24, %s17_s24  }
   0x2   : > { %p238_p1 = scmp.lt.s32.totalorder %s1619_s24, 3 }
   0x4   : > { %p239_p2 = pnand %p1297_p0, %p238_p1 }
   0x5   : > { %v1467_v0 = vld [vmem:[%s2345_s1] sm:$0xff] (!%p239_p2)   ;;  %s1298_s28 = sshll.u32 (!%p239_p2), %s1293_s25, 4  ;;  %v1468_v1 = vld [vmem:[%s2345_s1 + $0x8] sm:$0xff] (!%p239_p2)   ;;  %vm330_vm0 = vcmask (!%p239_p2), 261120   ;;  %v1471_v28 = vld [vmem:[%s2347_s3 + $0x10] sm:$0xff] (!%p239_p2)  }
   0x6   : > { %242 = sbr.rel (%p239_p2) target bundleno = 778 (0x30a), region = 48  ;;  %p271_p3 = scmp.lt.s32.totalorder (!%p239_p2), %s1298_s28, 31  ;;  %1375 = vmatprep.subr.bf16.mxu0 (!%p239_p2), %v1467_v0  ;;  %v1469_v26 = vld [vmem:[%s2347_s3] sm:$0xff] (!%p239_p2)   ;;  %v1470_v27 = vld [vmem:[%s2347_s3 + $0x8] sm:$0xff] (!%p239_p2)   ;;  %v1472_v29 = vld [vmem:[%s2347_s3 + $0x18] sm:$0xff] (!%p239_p2)  }
   0x7   : > { %1376 = vmatpush3.bf16.msra.mxu0 (!%p239_p2), %v1467_v0  ;;  %1395 = vmatprep.subr.bf16.mxu1 (!%p239_p2), %v1469_v26  ;;  %v1473_v30 = vld [vmem:[%s2347_s3 + $0x20] sm:$0xff] (!%p239_p2)   ;;  %v1474_v31 = vld [vmem:[%s2347_s3 + $0x28] sm:$0xff] (!%p239_p2)   ;;  %v1475_v32 = vld [vmem:[%s2347_s3 + $0x30] sm:$0xff] (!%p239_p2)  }
   0x8   : > { %1377 = vmatprep.subr.bf16.mxu0 (!%p239_p2), %v1468_v1  ;;  %1396 = vmatpush3.bf16.msra.mxu1 (!%p239_p2), %v1469_v26  ;;  %v1476_v33 = vld [vmem:[%s2347_s3 + $0x38] sm:$0xff] (!%p239_p2)   ;;  %v1736_v34 = vld [vmem:[%s2346_s2] ss:$0 sm:$0xff] (!%p239_p2) }
   0x9   : > { %1397 = vmatprep.subr.bf16.mxu1 (!%p239_p2), %v1470_v27 }
   0xb   : > { %1378 = vmatpush3.bf16.msra.mxu0 (!%p239_p2), %v1468_v1 }
   0xc   : > { %1398 = vmatpush3.bf16.msra.mxu1 (!%p239_p2), %v1470_v27 }
   0xd   : > { %s2393_s28 = smov (!%p271_p3, %s1298_s28), 31  ;;  %1399 = vmatprep.subr.bf16.mxu1 %v1471_v28 }
   0xe   : > { %s1299_s8 = sshll.u32 %s2393_s28, 3 }
   0xf   : > { %s1683_s11 = scalar_lea.vmem %s2344_s0, %s1299_s8  ;;  %s2307_s12 = scalar_lea.vmem %s2351_s7, %s1299_s8 }
  0x10   : > { %v283_v2 = vld [vmem:[%s1683_s11] sm:$0xff]  ;;  %v284_v3 = vld [vmem:[%s1683_s11 + $0x8] sm:$0xff]  ;;  %v285_v4 = vld [vmem:[%s1683_s11 + $0x10] sm:$0xff]  ;;  %1400 = vmatpush3.bf16.msra.mxu1 %v1471_v28 }
  0x11   : > { %v299_v5 = vpack.c.bf16 %v284_v3, %v283_v2  ;;  %v286_v6 = vld [vmem:[%s1683_s11 + $0x18] sm:$0xff]  ;;  %v287_v7 = vld [vmem:[%s1683_s11 + $0x20] sm:$0xff]  ;;  %v288_v8 = vld [vmem:[%s1683_s11 + $0x28] sm:$0xff]  ;;  %1401 = vmatprep.subr.bf16.mxu1 %v1472_v29 }
  0x12   : > { %v300_v9 = vpack.c.bf16 %v286_v6, %v285_v4  ;;  %v301_v10 = vpack.c.bf16 %v288_v8, %v287_v7  ;;  %v289_v11 = vld [vmem:[%s1683_s11 + $0x30] sm:$0xff]  ;;  %v290_v12 = vld [vmem:[%s1683_s11 + $0x38] sm:$0xff]  ;;  %v291_v13 = vld [vmem:[%s1683_s11 + $0x40] sm:$0xff] }
  0x13   : > { %1379 = vmatprep.mubr.msk.bf16.mxu0 %vm330_vm0, %v299_v5  ;;  %v292_v14 = vld [vmem:[%s1683_s11 + $0x48] sm:$0xff]  ;;  %v302_v15 = vpack.c.bf16 %v290_v12, %v289_v11  ;;  %v293_v17 = vld [vmem:[%s1683_s11 + $0x50] sm:$0xff]  ;;  %v294_v18 = vld [vmem:[%s1683_s11 + $0x58] sm:$0xff] }
  0x14   : > { %1380 = vmatmul.mubr.msk.bf16.vlgmr.msra.gmra.mrb[0].mxu0 %vm330_vm0, %v300_v9  ;;  %v303_v16 = vpack.c.bf16 %v292_v14, %v291_v13  ;;  %v295_v19 = vld [vmem:[%s1683_s11 + $0x60] sm:$0xff]  ;;  %v296_v20 = vld [vmem:[%s1683_s11 + $0x68] sm:$0xff]  ;;  %v304_v21 = vpack.c.bf16 %v294_v18, %v293_v17  ;;  %v297_v23 = vld [vmem:[%s1683_s11 + $0x70] sm:$0xff]  ;;  %1402 = vmatpush3.bf16.msra.mxu1 %v1472_v29 }
  0x15   : > { %1383 = vmatprep.mubr.msk.bf16.mxu0 %vm330_vm0, %v301_v10  ;;  %v305_v22 = vpack.c.bf16 %v296_v20, %v295_v19  ;;  %v298_v24 = vld [vmem:[%s1683_s11 + $0x78] sm:$0xff]  ;;  %1403 = vmatprep.subr.bf16.mxu1 %v1473_v30 }
  0x16   : > { %v306_v25 = vpack.c.bf16 %v298_v24, %v297_v23 }
  0x18   : > { %1404 = vmatpush3.bf16.msra.mxu1 %v1473_v30 }
  0x19   : > { %1405 = vmatprep.subr.bf16.mxu1 %v1474_v31 }
  0x1c   : > { %1384 = vmatmul.mubr.msk.bf16.gmra.mrb[4].mxu0 %vm330_vm0, %v302_v15  ;;  %1406 = vmatpush3.bf16.msra.mxu1 %v1474_v31 }
  0x1d   : > { %1387 = vmatprep.mubr.msk.bf16.mxu0 %vm330_vm0, %v303_v16  ;;  %1407 = vmatprep.subr.bf16.mxu1 %v1475_v32 }
  0x20   : > { %1408 = vmatpush3.bf16.msra.mxu1 %v1475_v32 }
  0x21   : > { %1409 = vmatprep.subr.bf16.mxu1 %v1476_v33 }
  0x24   : > { %1388 = vmatmul.mubr.msk.bf16.gmra.mrb[8].mxu0 %vm330_vm0, %v304_v21  ;;  %1410 = vmatpush3.bf16.msra.mxu1 %v1476_v33 }
  0x25   : > { %1391 = vmatprep.mubr.msk.bf16.mxu0 %vm330_vm0, %v305_v22 }
  0x2c   : > { %1392 = vmatmul.mubr.msk.bf16.gmra.mrb[12].mxu0 %vm330_vm0, %v306_v25 }
  0xe7   : > { %v1381_v35 = vpop.f32.mrb[0].mxu0 }
  0xe8   : > { %v1739_v36 = vadd.f32 %v1381_v35, %v1736_v34  ;;  %v389_v37 = vpop.f32.mrb[1].mxu0 }
  0xe9   : > { %v1742_v38 = vadd.f32 %v1736_v34, %v389_v37  ;;  %v1382_v39 = vpop.f32.mrb[2].mxu0 }
  0xea   : > { %v472_v40 = vmul.f32 1.442695, %v1739_v36  ;;  %v1746_v41 = vadd.f32 %v1382_v39, %v1736_v34  ;;  %v392_v42 = vpop.f32.mrb[3].mxu0  ;;  %vm454_vm2 = vcmp.gt.f32.partialorder %v1739_v36, 20.0 }
  0xeb   : > { %v468_v43 = vmul.f32 1.442695, %v1742_v38  ;;  %v1750_v44 = vadd.f32 %v1736_v34, %v392_v42  ;;  %vm452_vm3 = vcmp.gt.f32.partialorder %v1742_v38, 20.0 }
  0xec   : > { %1485 = vpow2.f32 %v472_v40  ;;  %v474_v46 = vmul.f32 1.442695, %v1746_v41  ;;  %vm455_vm6 = vcmp.gt.f32.partialorder %v1746_v41, 20.0 }
  0xed   : > { %1487 = vpow2.f32 %v468_v43  ;;  %v470_v45 = vmul.f32 1.442695, %v1750_v44  ;;  %vm453_vm4 = vcmp.gt.f32.partialorder %v1750_v44, 20.0 }
  0xef   : > { %v1385_v47 = vpop.f32.mrb[4].mxu0  ;;  %1489 = vpow2.f32 %v470_v45 }
  0xf0   : > { %v405_v48 = vpop.f32.mrb[5].mxu0  ;;  %1491 = vpow2.f32 %v474_v46  ;;  %v1761_v53 = vadd.f32 %v1385_v47, %v1736_v34 }
  0xf1   : > { %v1755_v49 = vadd.f32 %v1736_v34, %v405_v48  ;;  %v1386_v50 = vpop.f32.mrb[6].mxu0 }
  0xf2   : > { %v408_v51 = vpop.f32.mrb[7].mxu0  ;;  %v1767_v56 = vadd.f32 %v1386_v50, %v1736_v34  ;;  %v480_v61 = vmul.f32 1.442695, %v1761_v53  ;;  %vm458_vm11 = vcmp.gt.f32.partialorder %v1761_v53, 20.0 }
  0xf3   : > { %v1758_v52 = vadd.f32 %v1736_v34, %v408_v51  ;;  %v476_v54 = vmul.f32 1.442695, %v1755_v49  ;;  %vm456_vm9 = vcmp.gt.f32.partialorder %v1755_v49, 20.0 }
  0xf4   : > { %v482_v2 = vmul.f32 1.442695, %v1767_v56  ;;  %vm459_vm12 = vcmp.gt.f32.partialorder %v1767_v56, 20.0 }
  0xf5   : > { %v478_v58 = vmul.f32 1.442695, %v1758_v52  ;;  %1493 = vpow2.f32 %v476_v54  ;;  %vm457_vm10 = vcmp.gt.f32.partialorder %v1758_v52, 20.0 }
  0xf6   : > { %v1764_v55 = vpop.eup %1485 }
  0xf7   : > { %v1769_v57 = vpop.eup %1487  ;;  %v1389_v59 = vpop.f32.mrb[8].mxu0  ;;  %v518_v60 = vadd.f32 1.0, %v1764_v55  ;;  %v521_v11 = vmul.f32 -0.5, %v1764_v55  ;;  %v524_v14 = vand.u32 2147483647, %v1764_v55 }
  0xf8   : > { %v1775_v62 = vadd.f32 %v1389_v59, %v1736_v34  ;;  %v421_v63 = vpop.f32.mrb[9].mxu0  ;;  %v500_v0 = vadd.f32 1.0, %v1769_v57  ;;  %v503_v19 = vmul.f32 -0.5, %v1769_v57  ;;  %v506_v23 = vand.u32 2147483647, %v1769_v57 }
  0xf9   : > { %v1390_v1 = vpop.f32.mrb[10].mxu0  ;;  %1495 = vlog2.f32 %v518_v60  ;;  %v1779_v4 = vpop.eup %1489  ;;  %v1783_v6 = vadd.f32 %v1736_v34, %v421_v63  ;;  %v522_v37 = vadd.f32 1.0, %v521_v11  ;;  %vm1820_vm1 = vcmp.lt.f32.partialorder %v524_v14, 0.0004427343 }
  0xfa   : > { %v424_v3 = vpop.f32.mrb[11].mxu0  ;;  %1497 = vlog2.f32 %v500_v0  ;;  %v488_v5 = vmul.f32 1.442695, %v1775_v62  ;;  %v1785_v7 = vpop.eup %1491  ;;  %v1791_v9 = vadd.f32 %v1390_v1, %v1736_v34  ;;  %v509_v10 = vadd.f32 1.0, %v1779_v4 }
  0xfb   : > { %1499 = vpow2.f32 %v478_v58  ;;  %v1788_v8 = vadd.f32 %v1736_v34, %v424_v3  ;;  %v484_v12 = vmul.f32 1.442695, %v1783_v6  ;;  %v527_v15 = vadd.f32 1.0, %v1785_v7 }
  0xfc   : > { %1501 = vpow2.f32 %v480_v61  ;;  %v490_v20 = vmul.f32 1.442695, %v1791_v9  ;;  %v512_v28 = vmul.f32 -0.5, %v1779_v4  ;;  %v530_v29 = vmul.f32 -0.5, %v1785_v7 }
  0xfd   : > { %1503 = vpow2.f32 %v482_v2  ;;  %v486_v16 = vmul.f32 1.442695, %v1788_v8  ;;  %v504_v35 = vadd.f32 1.0, %v503_v19  ;;  %vm1830_vm5 = vcmp.lt.f32.partialorder %v506_v23, 0.0004427343 }
  0xfe   : > { %1505 = vpow2.f32 %v488_v5  ;;  %v515_v43 = vand.u32 2147483647, %v1779_v4  ;;  %v513_v46 = vadd.f32 1.0, %v512_v28  ;;  %v531_v47 = vadd.f32 1.0, %v530_v29 }
  0xff   : > { %v1393_v13 = vpop.f32.mrb[12].mxu0  ;;  %1507 = vlog2.f32 %v509_v10  ;;  %v1808_v24 = vpop.eup %1493  ;;  %v533_v59 = vand.u32 2147483647, %v1785_v7  ;;  %v505_v0 = vmul.f32 %v1769_v57, %v504_v35  ;;  %v523_v1 = vmul.f32 %v1764_v55, %v522_v37 }
 0x100   : > { %v1800_v17 = vadd.f32 %v1393_v13, %v1736_v34  ;;  %v437_v18 = vpop.f32.mrb[13].mxu0  ;;  %1509 = vlog2.f32 %v527_v15  ;;  %v536_v48 = vadd.f32 1.0, %v1808_v24  ;;  %v539_v60 = vmul.f32 -0.5, %v1808_v24 }
 0x101   : > { %v1805_v21 = vadd.f32 %v1736_v34, %v437_v18  ;;  %v1394_v22 = vpop.f32.mrb[14].mxu0  ;;  %1511 = vpow2.f32 %v484_v12  ;;  %v514_v5 = vmul.f32 %v1779_v4, %v513_v46  ;;  %vm1851_vm7 = vcmp.lt.f32.partialorder %v515_v43, 0.0004427343 }
 0x102   : > { %v496_v25 = vmul.f32 1.442695, %v1800_v17  ;;  %v1812_v26 = vadd.f32 %v1394_v22, %v1736_v34  ;;  %v440_v27 = vpop.f32.mrb[15].mxu0  ;;  %1513 = vpow2.f32 %v486_v16  ;;  %v532_v11 = vmul.f32 %v1785_v7, %v531_v47 }
 0x103   : > { %v1496_v30 = vpop.eup %1495  ;;  %v492_v31 = vmul.f32 1.442695, %v1805_v21  ;;  %v1818_v32 = vadd.f32 %v1736_v34, %v440_v27  ;;  %1515 = vpow2.f32 %v490_v20  ;;  %vm1860_vm8 = vcmp.lt.f32.partialorder %v533_v59, 0.0004427343 }
 0x104   : > { %v1498_v33 = vpop.eup %1497  ;;  %v498_v42 = vmul.f32 1.442695, %v1812_v26  ;;  %1517 = vpow2.f32 %v496_v25  ;;  %v520_v54 = vmul.f32 0.6931472, %v1496_v30  ;;  %v540_v4 = vadd.f32 1.0, %v539_v60 }
 0x105   : > { %v1824_v40 = vpop.eup %1499  ;;  %1519 = vpow2.f32 %v492_v31  ;;  %v494_v50 = vmul.f32 1.442695, %v1818_v32  ;;  %v502_v51 = vmul.f32 0.6931472, %v1498_v33 }
 0x106   : > { %v1835_v45 = vpop.eup %1501  ;;  %1521 = vlog2.f32 %v536_v48  ;;  %v545_v61 = vadd.f32 1.0, %v1824_v40  ;;  %v526_v55 = vsel %vm1820_vm1, %v523_v1, %v520_v54  ;;  %v548_v18 = vmul.f32 -0.5, %v1824_v40 }
 0x107   : > { %v1840_v58 = vpop.eup %1503  ;;  %1523 = vpow2.f32 %v498_v42  ;;  %v554_v2 = vadd.f32 1.0, %v1835_v45  ;;  %v508_v13 = vsel %vm1830_vm5, %v505_v0, %v502_v51  ;;  %v557_v19 = vmul.f32 -0.5, %v1835_v45 }
 0x108   : > { %v1845_v63 = vpop.eup %1505  ;;  %1525 = vlog2.f32 %v545_v61  ;;  %v563_v20 = vadd.f32 1.0, %v1840_v58  ;;  %v644_v23 = vsel %vm452_vm3, %v1742_v38, %v508_v13  ;;  %v646_v28 = vsel %vm454_vm2, %v1739_v36, %v526_v55 }
 0x109   : > { %v1508_v3 = vpop.eup %1507  ;;  %1527 = vpow2.f32 %v494_v50  ;;  %v551_v35 = vand.u32 2147483647, %v1824_v40  ;;  %v560_v36 = vand.u32 2147483647, %v1835_v45  ;;  %v541_v42 = vmul.f32 %v1808_v24, %v540_v4 }
 0x10a   : > { %v1510_v12 = vpop.eup %1509  ;;  %v511_v57 = vmul.f32 0.6931472, %v1508_v3  ;;  %1529 = vlog2.f32 %v554_v2  ;;  %v549_v34 = vadd.f32 1.0, %v548_v18  ;;  %v558_v43 = vadd.f32 1.0, %v557_v19 }
 0x10b   : > { %v529_v14 = vmul.f32 0.6931472, %v1510_v12  ;;  %v1864_v16 = vpop.eup %1511  ;;  %1531 = vlog2.f32 %v563_v20  ;;  %v566_v47 = vmul.f32 -0.5, %v1840_v58  ;;  %v569_v48 = vand.u32 2147483647, %v1840_v58 }
 0x10c   : > { %v517_v7 = vsel %vm1851_vm7, %v514_v5, %v511_v57  ;;  %v1871_v22 = vpop.eup %1513  ;;  %v572_v37 = vadd.f32 1.0, %v1864_v16  ;;  %v590_v50 = vadd.f32 1.0, %v1845_v63  ;;  %vm1914_vm14 = vcmp.lt.f32.partialorder %v551_v35, 0.0004427343 }
 0x10d   : > { %v645_v25 = vsel %vm453_vm4, %v1750_v44, %v517_v7  ;;  %v535_v27 = vsel %vm1860_vm8, %v532_v11, %v529_v14  ;;  %v1884_v29 = vpop.eup %1515  ;;  %v542_v44 = vand.u32 2147483647, %v1808_v24  ;;  %v575_v24 = vmul.f32 -0.5, %v1864_v16 }
 0x10e   : > { %v660_v30 = vpack.c.bf16 %v645_v25, %v644_v23  ;;  %v647_v38 = vsel %vm455_vm6, %v1746_v41, %v535_v27  ;;  %v1892_v31 = vpop.eup %1517  ;;  %v581_v41 = vadd.f32 1.0, %v1871_v22  ;;  %1533 = vlog2.f32 %v572_v37 }
 0x10f   : > { %v661_v33 = vpack.c.bf16 %v647_v38, %v646_v28  ;;  %v1897_v39 = vpop.eup %1519  ;;  %v584_v59 = vmul.f32 -0.5, %v1871_v22  ;;  %vm1910_vm13 = vcmp.lt.f32.partialorder %v542_v44, 0.0004427343  ;;  %vm1918_vm15 = vcmp.lt.f32.partialorder %v560_v36, 0.0004427343 }
 0x110   : > { %1411 = vmatprep.mubr.bf16.mxu1 %v660_v30  ;;  %v1522_v46 = vpop.eup %1521  ;;  %1535 = vlog2.f32 %v581_v41  ;;  %v550_v10 = vmul.f32 %v1824_v40, %v549_v34  ;;  %v559_v11 = vmul.f32 %v1835_v45, %v558_v43  ;;  %v567_v13 = vadd.f32 1.0, %v566_v47 }
 0x111   : > { %1412 = vmatmul.mubr.bf16.vlgmr.msra.gmra.mrb[0].mxu1 %v661_v33  ;;  %v1904_v51 = vpop.eup %1523  ;;  %v538_v54 = vmul.f32 0.6931472, %v1522_v46  ;;  %1537 = vlog2.f32 %v590_v50  ;;  %vm1928_vm0 = vcmp.lt.f32.partialorder %v569_v48, 0.0004427343  ;;  %v578_v55 = vand.u32 2147483647, %v1864_v16 }
 0x112   : > { %v1526_v60 = vpop.eup %1525  ;;  %v599_v14 = vadd.f32 1.0, %v1884_v29  ;;  %v576_v7 = vadd.f32 1.0, %v575_v24  ;;  %v585_v18 = vadd.f32 1.0, %v584_v59  ;;  %vm460_vm1 = vcmp.gt.f32.partialorder %v1783_v6, 20.0 }
 0x113   : > { %v1922_v2 = vpop.eup %1527  ;;  %v544_v3 = vsel %vm1910_vm13, %v541_v42, %v538_v54  ;;  %v547_v5 = vmul.f32 0.6931472, %v1526_v60  ;;  %vm461_vm2 = vcmp.gt.f32.partialorder %v1788_v8, 20.0  ;;  %v593_v19 = vmul.f32 -0.5, %v1845_v63 }
 0x114   : > { %v1530_v12 = vpop.eup %1529  ;;  %v648_v40 = vsel %vm456_vm9, %v1755_v49, %v544_v3  ;;  %1539 = vlog2.f32 %v599_v14  ;;  %v587_v27 = vand.u32 2147483647, %v1871_v22  ;;  %v608_v28 = vadd.f32 1.0, %v1897_v39 }
 0x115   : > { %v553_v15 = vsel %vm1914_vm14, %v550_v10, %v547_v5  ;;  %v556_v4 = vmul.f32 0.6931472, %v1530_v12  ;;  %v1532_v20 = vpop.eup %1531  ;;  %v568_v38 = vmul.f32 %v1840_v58, %v567_v13  ;;  %vm1950_vm3 = vcmp.lt.f32.partialorder %v578_v55, 0.0004427343 }
 0x116   : > { %v649_v45 = vsel %vm457_vm10, %v1758_v52, %v553_v15  ;;  %v565_v30 = vmul.f32 0.6931472, %v1532_v20  ;;  %v602_v52 = vmul.f32 -0.5, %v1884_v29  ;;  %v577_v44 = vmul.f32 %v1864_v16, %v576_v7 }
 0x117   : > { %v662_v23 = vpack.c.bf16 %v649_v45, %v648_v40  ;;  %v562_v25 = vsel %vm1918_vm15, %v559_v11, %v556_v4  ;;  %v586_v33 = vmul.f32 %v1871_v22, %v585_v18  ;;  %1541 = vlog2.f32 %v608_v28 }
 0x118   : > { %v617_v35 = vadd.f32 1.0, %v1922_v2  ;;  %v1534_v36 = vpop.eup %1533  ;;  %v571_v37 = vsel %vm1928_vm0, %v568_v38, %v565_v30  ;;  %v650_v58 = vsel %vm458_vm11, %v1761_v53, %v562_v25  ;;  %v594_v42 = vadd.f32 1.0, %v593_v19 }
 0x119   : > { %1415 = vmatprep.mubr.bf16.mxu1 %v662_v23  ;;  %v626_v34 = vadd.f32 1.0, %v1892_v31  ;;  %v651_v16 = vsel %vm459_vm12, %v1767_v56, %v571_v37  ;;  %v574_v22 = vmul.f32 0.6931472, %v1534_v36  ;;  %v611_v41 = vmul.f32 -0.5, %v1897_v39 }
 0x11a   : > { %v1536_v43 = vpop.eup %1535  ;;  %1543 = vlog2.f32 %v617_v35  ;;  %v663_v47 = vpack.c.bf16 %v651_v16, %v650_v58  ;;  %v596_v50 = vand.u32 2147483647, %v1845_v63  ;;  %v603_v54 = vadd.f32 1.0, %v602_v52  ;;  %v1482_v16 = vld [vmem:[%s2349_s5 + $0x28] sm:$0xff]  }
 0x11b   : > { %v1538_v46 = vpop.eup %1537  ;;  %v583_v48 = vmul.f32 0.6931472, %v1536_v43  ;;  %v580_v53 = vsel %vm1950_vm3, %v577_v44, %v574_v22  ;;  %vm588_vm4 = vcmp.lt.f32.partialorder %v587_v27, 0.0004427343  ;;  %1545 = vlog2.f32 %v626_v34  ;;  %v1481_v43 = vld [vmem:[%s2349_s5 + $0x20] sm:$0xff]   ;;  %v1483_v22 = vld [vmem:[%s2349_s5 + $0x30] sm:$0xff]  }
 0x11c   : > { %v592_v24 = vmul.f32 0.6931472, %v1538_v46  ;;  %1416 = vmatmul.mubr.bf16.gmra.mrb[4].mxu1 %v663_v47  ;;  %v595_v56 = vmul.f32 %v1845_v63, %v594_v42  ;;  %v605_v60 = vand.u32 2147483647, %v1884_v29  ;;  %v620_v61 = vmul.f32 -0.5, %v1922_v2 }
 0x11d   : > { %v589_v59 = vsel %vm588_vm4, %v586_v33, %v583_v48  ;;  %v652_v0 = vsel %vm460_vm1, %v1783_v6, %v580_v53  ;;  %v612_v3 = vadd.f32 1.0, %v611_v41  ;;  %v635_v5 = vadd.f32 1.0, %v1904_v51  ;;  %v1484_v41 = vld [vmem:[%s2349_s5 + $0x38] sm:$0xff]   ;;  %v2037_v46 = vld [vmem:[%s2348_s4] ss:$0 sm:$0xff] }
 0x11e   : > { %v653_v1 = vsel %vm461_vm2, %v1788_v8, %v589_v59  ;;  %v1540_v10 = vpop.eup %1539  ;;  %vm1981_vm5 = vcmp.lt.f32.partialorder %v596_v50, 0.0004427343  ;;  %v604_v63 = vmul.f32 %v1884_v29, %v603_v54  ;;  %v614_v6 = vand.u32 2147483647, %v1897_v39 }
 0x11f   : > { %v664_v11 = vpack.c.bf16 %v653_v1, %v652_v0  ;;  %v598_v13 = vsel %vm1981_vm5, %v595_v56, %v592_v24  ;;  %v601_v57 = vmul.f32 0.6931472, %v1540_v10  ;;  %1547 = vlog2.f32 %v635_v5 }
 0x120   : > { %vm462_vm6 = vcmp.gt.f32.partialorder %v1775_v62, 20.0  ;;  %vm606_vm7 = vcmp.lt.f32.partialorder %v605_v60, 0.0004427343  ;;  %v621_v8 = vadd.f32 1.0, %v620_v61  ;;  %v629_v55 = vmul.f32 -0.5, %v1892_v31 }
 0x121   : > { %1419 = vmatprep.mubr.bf16.mxu1 %v664_v11  ;;  %v1542_v14 = vpop.eup %1541  ;;  %vm463_vm8 = vcmp.gt.f32.partialorder %v1791_v9, 20.0  ;;  %v607_v15 = vsel %vm606_vm7, %v604_v63, %v601_v57  ;;  %v613_v29 = vmul.f32 %v1897_v39, %v612_v3  ;;  %v623_v4 = vand.u32 2147483647, %v1922_v2 }
 0x122   : > { %v654_v7 = vsel %vm462_vm6, %v1775_v62, %v598_v13  ;;  %v655_v18 = vsel %vm463_vm8, %v1791_v9, %v607_v15  ;;  %v610_v40 = vmul.f32 0.6931472, %v1542_v14  ;;  %v638_v45 = vmul.f32 -0.5, %v1904_v51 }
 0x123   : > { %v665_v20 = vpack.c.bf16 %v655_v18, %v654_v7  ;;  %vm615_vm9 = vcmp.lt.f32.partialorder %v614_v6, 0.0004427343  ;;  %v622_v27 = vmul.f32 %v1922_v2, %v621_v8  ;;  %v630_v28 = vadd.f32 1.0, %v629_v55 }
 0x124   : > { %v1544_v19 = vpop.eup %1543  ;;  %v616_v23 = vsel %vm615_vm9, %v613_v29, %v610_v40  ;;  %vm464_vm10 = vcmp.gt.f32.partialorder %v1805_v21, 20.0  ;;  %vm624_vm11 = vcmp.lt.f32.partialorder %v623_v4, 0.0004427343  ;;  %v632_v62 = vand.u32 2147483647, %v1892_v31 }
 0x125   : > { %v619_v25 = vmul.f32 0.6931472, %v1544_v19  ;;  %v1546_v30 = vpop.eup %1545  ;;  %1420 = vmatmul.mubr.bf16.gmra.mrb[8].mxu1 %v665_v20  ;;  %vm465_vm12 = vcmp.gt.f32.partialorder %v1818_v32, 20.0  ;;  %v639_v38 = vadd.f32 1.0, %v638_v45  ;;  %v656_v49 = vsel %vm464_vm10, %v1805_v21, %v616_v23 }
 0x126   : > { %v628_v39 = vmul.f32 0.6931472, %v1546_v30  ;;  %v641_v44 = vand.u32 2147483647, %v1904_v51  ;;  %v631_v33 = vmul.f32 %v1892_v31, %v630_v28  ;;  %vm633_vm13 = vcmp.lt.f32.partialorder %v632_v62, 0.0004427343 }
 0x127   : > { %v625_v9 = vsel %vm624_vm11, %v622_v27, %v619_v25  ;;  %v640_v58 = vmul.f32 %v1904_v51, %v639_v38  ;;  %vm466_vm15 = vcmp.gt.f32.partialorder %v1800_v17, 20.0  ;;  %vm467_vm0 = vcmp.gt.f32.partialorder %v1812_v26, 20.0  ;;  %v1477_v31 = vld [vmem:[%s2349_s5] sm:$0xff]   ;;  %v1478_v51 = vld [vmem:[%s2349_s5 + $0x8] sm:$0xff]  }
 0x128   : > { %v657_v52 = vsel %vm465_vm12, %v1818_v32, %v625_v9  ;;  %v634_v36 = vsel %vm633_vm13, %v631_v33, %v628_v39  ;;  %vm642_vm14 = vcmp.lt.f32.partialorder %v641_v44, 0.0004427343  ;;  %1427 = vmatprep.subr.bf16.mxu0 %v1477_v31 }
 0x129   : > { %v666_v2 = vpack.c.bf16 %v657_v52, %v656_v49  ;;  %v1548_v35 = vpop.eup %1547  ;;  %v658_v32 = vsel %vm466_vm15, %v1800_v17, %v634_v36  ;;  %1428 = vmatpush3.bf16.msra.mxu0 %v1477_v31  ;;  %v1479_v17 = vld [vmem:[%s2349_s5 + $0x10] sm:$0xff]  }
 0x12a   : > { %v637_v37 = vmul.f32 0.6931472, %v1548_v35  ;;  %1429 = vmatprep.subr.bf16.mxu0 %v1478_v51 }
 0x12b   : > { %1423 = vmatprep.mubr.bf16.mxu1 %v666_v2 }
 0x12c   : > { %v643_v21 = vsel %vm642_vm14, %v640_v58, %v637_v37 }
 0x12d   : > { %v659_v42 = vsel %vm467_vm0, %v1812_v26, %v643_v21  ;;  %1430 = vmatpush3.bf16.msra.mxu0 %v1478_v51  ;;  %v1480_v26 = vld [vmem:[%s2349_s5 + $0x18] sm:$0xff]  }
 0x12e   : > { %v667_v34 = vpack.c.bf16 %v659_v42, %v658_v32  ;;  %1431 = vmatprep.subr.bf16.mxu0 %v1479_v17 }
 0x130   : > { %1424 = vmatmul.mubr.bf16.gmra.mrb[12].mxu1 %v667_v34 }
 0x131   : > { %1432 = vmatpush3.bf16.msra.mxu0 %v1479_v17 }
 0x132   : > { %1433 = vmatprep.subr.bf16.mxu0 %v1480_v26 }
 0x135   : > { %1434 = vmatpush3.bf16.msra.mxu0 %v1480_v26 }
 0x136   : > { %1435 = vmatprep.subr.bf16.mxu0 %v1481_v43 }
 0x139   : > { %1436 = vmatpush3.bf16.msra.mxu0 %v1481_v43 }
 0x13a   : > { %1437 = vmatprep.subr.bf16.mxu0 %v1482_v16 }
 0x13d   : > { %1438 = vmatpush3.bf16.msra.mxu0 %v1482_v16 }
 0x13e   : > { %1439 = vmatprep.subr.bf16.mxu0 %v1483_v22 }
 0x141   : > { %1440 = vmatpush3.bf16.msra.mxu0 %v1483_v22 }
 0x142   : > { %1441 = vmatprep.subr.bf16.mxu0 %v1484_v41 }
 0x145   : > { %1442 = vmatpush3.bf16.msra.mxu0 %v1484_v41 }
 0x1e4   : > { %v1413_v47 = vpop.f32.mrb[0].mxu1 }
 0x1e5   : > { %v2040_v48 = vadd.f32 %v1413_v47, %v2037_v46  ;;  %v773_v50 = vpop.f32.mrb[1].mxu1 }
 0x1e6   : > { %v2043_v54 = vadd.f32 %v2037_v46, %v773_v50  ;;  %v1414_v53 = vpop.f32.mrb[2].mxu1 }
 0x1e7   : > { %v856_v24 = vmul.f32 1.442695, %v2040_v48  ;;  %v2047_v59 = vadd.f32 %v1414_v53, %v2037_v46  ;;  %v776_v56 = vpop.f32.mrb[3].mxu1  ;;  %vm838_vm1 = vcmp.gt.f32.partialorder %v2040_v48, 20.0 }
 0x1e8   : > { %v852_v60 = vmul.f32 1.442695, %v2043_v54  ;;  %v2051_v61 = vadd.f32 %v2037_v46, %v776_v56  ;;  %vm836_vm5 = vcmp.gt.f32.partialorder %v2043_v54, 20.0 }
 0x1e9   : > { %1549 = vpow2.f32 %v856_v24  ;;  %v858_v0 = vmul.f32 1.442695, %v2047_v59  ;;  %vm839_vm3 = vcmp.gt.f32.partialorder %v2047_v59, 20.0 }
 0x1ea   : > { %1551 = vpow2.f32 %v852_v60  ;;  %v854_v1 = vmul.f32 1.442695, %v2051_v61  ;;  %vm837_vm6 = vcmp.gt.f32.partialorder %v2051_v61, 20.0 }
 0x1eb   : > { %1553 = vpow2.f32 %v858_v0 }
 0x1ec   : > { %1555 = vpow2.f32 %v854_v1 }
 0x1ef   : > { %v1417_v3 = vpop.f32.mrb[4].mxu1 }
 0x1f0   : > { %v2056_v10 = vadd.f32 %v1417_v3, %v2037_v46  ;;  %v789_v11 = vpop.f32.mrb[5].mxu1 }
 0x1f1   : > { %v2061_v13 = vadd.f32 %v2037_v46, %v789_v11  ;;  %v1418_v57 = vpop.f32.mrb[6].mxu1 }
 0x1f2   : > { %v864_v8 = vmul.f32 1.442695, %v2056_v10  ;;  %v2065_v55 = vadd.f32 %v1418_v57, %v2037_v46  ;;  %v792_v14 = vpop.f32.mrb[7].mxu1  ;;  %vm842_vm9 = vcmp.gt.f32.partialorder %v2056_v10, 20.0 }
 0x1f3   : > { %v1550_v5 = vpop.eup %1549  ;;  %v860_v4 = vmul.f32 1.442695, %v2061_v13  ;;  %v2073_v45 = vadd.f32 %v2037_v46, %v792_v14  ;;  %vm840_vm10 = vcmp.gt.f32.partialorder %v2061_v13, 20.0 }
 0x1f4   : > { %v2058_v12 = vpop.eup %1551  ;;  %v902_v63 = vadd.f32 1.0, %v1550_v5  ;;  %v905_v18 = vmul.f32 -0.5, %v1550_v5  ;;  %v866_v40 = vmul.f32 1.442695, %v2065_v55  ;;  %v908_v62 = vand.u32 2147483647, %v1550_v5 }
 0x1f5   : > { %v1554_v6 = vpop.eup %1553  ;;  %v884_v7 = vadd.f32 1.0, %v2058_v12  ;;  %v862_v20 = vmul.f32 1.442695, %v2073_v45  ;;  %v887_v37 = vmul.f32 -0.5, %v2058_v12  ;;  %v890_v53 = vand.u32 2147483647, %v2058_v12 }
 0x1f6   : > { %1557 = vlog2.f32 %v902_v63  ;;  %v911_v15 = vadd.f32 1.0, %v1554_v6  ;;  %v2067_v29 = vpop.eup %1555  ;;  %v914_v19 = vmul.f32 -0.5, %v1554_v6  ;;  %v906_v30 = vadd.f32 1.0, %v905_v18 }
 0x1f7   : > { %1559 = vpow2.f32 %v864_v8  ;;  %v893_v25 = vadd.f32 1.0, %v2067_v29  ;;  %v917_v38 = vand.u32 2147483647, %v1554_v6  ;;  %vm2095_vm2 = vcmp.lt.f32.partialorder %v908_v62, 0.0004427343 }
 0x1f8   : > { %1561 = vlog2.f32 %v911_v15  ;;  %v1421_v23 = vpop.f32.mrb[8].mxu1  ;;  %v915_v52 = vadd.f32 1.0, %v914_v19  ;;  %v907_v32 = vmul.f32 %v1550_v5, %v906_v30  ;;  %v896_v34 = vmul.f32 -0.5, %v2067_v29 }
 0x1f9   : > { %1563 = vpow2.f32 %v860_v4  ;;  %v2078_v27 = vadd.f32 %v1421_v23, %v2037_v46  ;;  %v805_v28 = vpop.f32.mrb[9].mxu1  ;;  %vm2101_vm4 = vcmp.lt.f32.partialorder %v917_v38, 0.0004427343  ;;  %v888_v50 = vadd.f32 1.0, %v887_v37 }
 0x1fa   : > { %1565 = vlog2.f32 %v884_v7  ;;  %v2081_v9 = vadd.f32 %v2037_v46, %v805_v28  ;;  %v1422_v39 = vpop.f32.mrb[10].mxu1  ;;  %v916_v22 = vmul.f32 %v1554_v6, %v915_v52  ;;  %v897_v56 = vadd.f32 1.0, %v896_v34 }
 0x1fb   : > { %1567 = vpow2.f32 %v866_v40  ;;  %v808_v49 = vpop.f32.mrb[11].mxu1  ;;  %v872_v35 = vmul.f32 1.442695, %v2078_v27  ;;  %v2090_v36 = vadd.f32 %v1422_v39, %v2037_v46  ;;  %v899_v8 = vand.u32 2147483647, %v2067_v29 }
 0x1fc   : > { %1569 = vpow2.f32 %v862_v20  ;;  %v868_v44 = vmul.f32 1.442695, %v2081_v9  ;;  %v2085_v2 = vadd.f32 %v2037_v46, %v808_v49  ;;  %v889_v15 = vmul.f32 %v2058_v12, %v888_v50 }
 0x1fd   : > { %1571 = vlog2.f32 %v893_v25  ;;  %v874_v47 = vmul.f32 1.442695, %v2090_v36  ;;  %vm2136_vm7 = vcmp.lt.f32.partialorder %v890_v53, 0.0004427343  ;;  %v898_v19 = vmul.f32 %v2067_v29, %v897_v56 }
 0x1fe   : > { %v870_v17 = vmul.f32 1.442695, %v2085_v2  ;;  %1573 = vpow2.f32 %v868_v44  ;;  %vm900_vm8 = vcmp.lt.f32.partialorder %v899_v8, 0.0004427343  ;;  %vm841_vm12 = vcmp.gt.f32.partialorder %v2073_v45, 20.0 }
 0x1ff   : > { %1575 = vpow2.f32 %v872_v35  ;;  %vm843_vm13 = vcmp.gt.f32.partialorder %v2065_v55, 20.0 }
 0x200   : > { %v1558_v33 = vpop.eup %1557 }
 0x201   : > { %v2093_v58 = vpop.eup %1559  ;;  %v904_v21 = vmul.f32 0.6931472, %v1558_v33 }
 0x202   : > { %v1562_v31 = vpop.eup %1561  ;;  %v938_v26 = vadd.f32 1.0, %v2093_v58  ;;  %v941_v30 = vmul.f32 -0.5, %v2093_v58  ;;  %v944_v42 = vand.u32 2147483647, %v2093_v58 }
 0x203   : > { %v910_v43 = vsel %vm2095_vm2, %v907_v32, %v904_v21  ;;  %v913_v16 = vmul.f32 0.6931472, %v1562_v31  ;;  %v2109_v41 = vpop.eup %1563  ;;  %v1425_v5 = vpop.f32.mrb[12].mxu1  ;;  %vm845_vm2 = vcmp.gt.f32.partialorder %v2085_v2, 20.0 }
 0x204   : > { %v920_v60 = vadd.f32 1.0, %v2109_v41  ;;  %1577 = vlog2.f32 %v938_v26  ;;  %v1566_v0 = vpop.eup %1565  ;;  %v1030_v1 = vsel %vm838_vm1, %v2040_v48, %v910_v43  ;;  %v821_v57 = vpop.f32.mrb[13].mxu1  ;;  %v2134_v7 = vadd.f32 %v1425_v5, %v2037_v46 }
 0x205   : > { %v919_v24 = vsel %vm2101_vm4, %v916_v22, %v913_v16  ;;  %1579 = vpow2.f32 %v870_v17  ;;  %v2122_v11 = vpop.eup %1567  ;;  %v886_v6 = vmul.f32 0.6931472, %v1566_v0  ;;  %v2130_v48 = vadd.f32 %v2037_v46, %v821_v57 }
 0x206   : > { %v1031_v3 = vsel %vm839_vm3, %v2047_v59, %v919_v24  ;;  %1581 = vlog2.f32 %v920_v60  ;;  %v2125_v14 = vpop.eup %1569  ;;  %v1426_v59 = vpop.f32.mrb[14].mxu1  ;;  %v947_v62 = vadd.f32 1.0, %v2122_v11  ;;  %v880_v52 = vmul.f32 1.442695, %v2134_v7 }
 0x207   : > { %v1045_v63 = vpack.c.bf16 %v1031_v3, %v1030_v1  ;;  %v1572_v4 = vpop.eup %1571  ;;  %1583 = vpow2.f32 %v874_v47  ;;  %v824_v18 = vpop.f32.mrb[15].mxu1  ;;  %v876_v20 = vmul.f32 1.442695, %v2130_v48  ;;  %v892_v12 = vsel %vm2136_vm7, %v889_v15, %v886_v6 }
 0x208   : > { %v2143_v23 = vadd.f32 %v2037_v46, %v824_v18  ;;  %v895_v25 = vmul.f32 0.6931472, %v1572_v4  ;;  %v929_v28 = vadd.f32 1.0, %v2125_v14  ;;  %v2151_v39 = vadd.f32 %v1426_v59, %v2037_v46  ;;  %v2154_v49 = vpop.eup %1573 }
 0x209   : > { %1585 = vpow2.f32 %v876_v20  ;;  %v1028_v44 = vsel %vm836_vm5, %v2043_v54, %v892_v12  ;;  %v923_v35 = vmul.f32 -0.5, %v2109_v41  ;;  %v2164_v37 = vpop.eup %1575  ;;  %v932_v21 = vmul.f32 -0.5, %v2125_v14 }
 0x20a   : > { %v878_v29 = vmul.f32 1.442695, %v2143_v23  ;;  %v901_v38 = vsel %vm900_vm8, %v898_v19, %v895_v25  ;;  %v882_v54 = vmul.f32 1.442695, %v2151_v39  ;;  %v956_v31 = vadd.f32 1.0, %v2154_v49 }
 0x20b   : > { %v1029_v33 = vsel %vm837_vm6, %v2051_v61, %v901_v38  ;;  %v942_v61 = vadd.f32 1.0, %v941_v30  ;;  %v924_v17 = vadd.f32 1.0, %v923_v35  ;;  %v926_v26 = vand.u32 2147483647, %v2109_v41 }
 0x20c   : > { %1587 = vpow2.f32 %v878_v29  ;;  %v1044_v46 = vpack.c.bf16 %v1029_v33, %v1028_v44  ;;  %v950_v43 = vmul.f32 -0.5, %v2122_v11  ;;  %v933_v16 = vadd.f32 1.0, %v932_v21 }
 0x20d   : > { %1589 = vlog2.f32 %v929_v28  ;;  %v935_v22 = vand.u32 2147483647, %v2125_v14  ;;  %vm2179_vm11 = vcmp.lt.f32.partialorder %v944_v42, 0.0004427343  ;;  %v959_v56 = vmul.f32 -0.5, %v2154_v49 }
 0x20e   : > { %v1578_v32 = vpop.eup %1577  ;;  %1443 = vmatprep.mubr.bf16.mxu0 %v1044_v46  ;;  %1591 = vlog2.f32 %v947_v62  ;;  %v943_v0 = vmul.f32 %v2093_v58, %v942_v61  ;;  %v953_v1 = vand.u32 2147483647, %v2122_v11  ;;  %v974_v3 = vadd.f32 1.0, %v2164_v37 }
 0x20f   : > { %v2168_v34 = vpop.eup %1579  ;;  %1593 = vpow2.f32 %v880_v52  ;;  %1444 = vmatmul.mubr.bf16.vlgmr.msra.gmra.mrb[16].mxu0 %v1045_v63  ;;  %v940_v47 = vmul.f32 0.6931472, %v1578_v32  ;;  %v925_v5 = vmul.f32 %v2109_v41, %v924_v17  ;;  %vm2191_vm14 = vcmp.lt.f32.partialorder %v926_v26, 0.0004427343 }
 0x210   : > { %v1582_v51 = vpop.eup %1581  ;;  %1595 = vlog2.f32 %v956_v31  ;;  %v965_v60 = vadd.f32 1.0, %v2168_v34  ;;  %v951_v57 = vadd.f32 1.0, %v950_v43  ;;  %v934_v8 = vmul.f32 %v2125_v14, %v933_v16 }
 0x211   : > { %v2177_v50 = vpop.eup %1583  ;;  %v922_v53 = vmul.f32 0.6931472, %v1582_v51  ;;  %1597 = vpow2.f32 %v882_v54  ;;  %vm2198_vm15 = vcmp.lt.f32.partialorder %v935_v22, 0.0004427343  ;;  %v946_v59 = vsel %vm2179_vm11, %v943_v0, %v940_v47 }
 0x212   : > { %1599 = vlog2.f32 %v965_v60  ;;  %v960_v15 = vadd.f32 1.0, %v959_v56  ;;  %v962_v4 = vand.u32 2147483647, %v2154_v49  ;;  %v983_v18 = vadd.f32 1.0, %v2177_v50 }
 0x213   : > { %v2195_v6 = vpop.eup %1585  ;;  %1601 = vlog2.f32 %v974_v3  ;;  %v928_v41 = vsel %vm2191_vm14, %v925_v5, %v922_v53  ;;  %vm2210_vm0 = vcmp.lt.f32.partialorder %v953_v1, 0.0004427343  ;;  %v968_v19 = vmul.f32 -0.5, %v2168_v34 }
 0x214   : > { %v977_v20 = vmul.f32 -0.5, %v2164_v37  ;;  %v992_v12 = vadd.f32 1.0, %v2195_v6  ;;  %v952_v28 = vmul.f32 %v2122_v11, %v951_v57  ;;  %v1034_v30 = vsel %vm842_vm9, %v2056_v10, %v946_v59 }
 0x215   : > { %v971_v62 = vand.u32 2147483647, %v2168_v34  ;;  %1603 = vlog2.f32 %v983_v18  ;;  %vm844_vm1 = vcmp.gt.f32.partialorder %v2081_v9, 20.0  ;;  %v1032_v52 = vsel %vm840_vm10, %v2061_v13, %v928_v41 }
 0x216   : > { %v2208_v40 = vpop.eup %1587  ;;  %v986_v44 = vmul.f32 -0.5, %v2177_v50  ;;  %1605 = vlog2.f32 %v992_v12  ;;  %v961_v10 = vmul.f32 %v2154_v49, %v960_v15  ;;  %vm2231_vm3 = vcmp.lt.f32.partialorder %v962_v4, 0.0004427343 }
 0x217   : > { %v1590_v25 = vpop.eup %1589  ;;  %v1001_v46 = vadd.f32 1.0, %v2208_v40  ;;  %v969_v42 = vadd.f32 1.0, %v968_v19  ;;  %v978_v13 = vadd.f32 1.0, %v977_v20  ;;  %v980_v54 = vand.u32 2147483647, %v2164_v37 }
 0x218   : > { %v1592_v29 = vpop.eup %1591  ;;  %v931_v38 = vmul.f32 0.6931472, %v1590_v25  ;;  %v995_v51 = vmul.f32 -0.5, %v2195_v6  ;;  %v987_v16 = vadd.f32 1.0, %v986_v44  ;;  %vm2250_vm4 = vcmp.lt.f32.partialorder %v971_v62, 0.0004427343 }
 0x219   : > { %v2228_v11 = vpop.eup %1593  ;;  %v949_v33 = vmul.f32 0.6931472, %v1592_v29  ;;  %1607 = vlog2.f32 %v1001_v46  ;;  %vm2259_vm5 = vcmp.lt.f32.partialorder %v980_v54, 0.0004427343  ;;  %v1004_v5 = vmul.f32 -0.5, %v2208_v40 }
 0x21a   : > { %v1596_v21 = vpop.eup %1595  ;;  %v937_v32 = vsel %vm2198_vm15, %v934_v8, %v931_v38  ;;  %v1010_v24 = vadd.f32 1.0, %v2228_v11  ;;  %v979_v8 = vmul.f32 %v2164_v37, %v978_v13  ;;  %v988_v58 = vmul.f32 %v2177_v50, %v987_v16 }
 0x21b   : > { %v1033_v61 = vsel %vm841_vm12, %v2073_v45, %v937_v32  ;;  %v955_v49 = vsel %vm2210_vm0, %v952_v28, %v949_v33  ;;  %v958_v31 = vmul.f32 0.6931472, %v1596_v21  ;;  %v2245_v17 = vpop.eup %1597  ;;  %v989_v45 = vand.u32 2147483647, %v2177_v50 }
 0x21c   : > { %v1046_v26 = vpack.c.bf16 %v1033_v61, %v1032_v52  ;;  %v1035_v43 = vsel %vm843_vm13, %v2065_v55, %v955_v49  ;;  %v1600_v22 = vpop.eup %1599  ;;  %v970_v55 = vmul.f32 %v2168_v34, %v969_v42  ;;  %1609 = vlog2.f32 %v1010_v24 }
 0x21d   : > { %v1047_v47 = vpack.c.bf16 %v1035_v43, %v1034_v30  ;;  %v1602_v56 = vpop.eup %1601  ;;  %v964_v60 = vsel %vm2231_vm3, %v961_v10, %v958_v31  ;;  %v967_v0 = vmul.f32 0.6931472, %v1600_v22  ;;  %v1019_v63 = vadd.f32 1.0, %v2245_v17 }
 0x21e   : > { %1447 = vmatprep.mubr.bf16.mxu0 %v1046_v26  ;;  %v976_v3 = vmul.f32 0.6931472, %v1602_v56  ;;  %v996_v59 = vadd.f32 1.0, %v995_v51  ;;  %v1036_v41 = vsel %vm844_vm1, %v2081_v9, %v964_v60  ;;  %v998_v4 = vand.u32 2147483647, %v2195_v6 }
 0x21f   : > { %1448 = vmatmul.mubr.bf16.gmra.mrb[20].mxu0 %v1047_v47  ;;  %v973_v57 = vsel %vm2250_vm4, %v970_v55, %v967_v0  ;;  %v1604_v34 = vpop.eup %1603  ;;  %1611 = vlog2.f32 %v1019_v63  ;;  %v1013_v50 = vmul.f32 -0.5, %v2228_v11  ;;  %vm846_vm6 = vcmp.gt.f32.partialorder %v2078_v27, 20.0  ;;  %v1322_v26 = vld [vmem:[%s2350_s6] ss:$0 sm:$0xff] }
 0x220   : > { %v1037_v15 = vsel %vm845_vm2, %v2085_v2, %v973_v57  ;;  %v1606_v18 = vpop.eup %1605  ;;  %v982_v37 = vsel %vm2259_vm5, %v979_v8, %v976_v3  ;;  %v985_v19 = vmul.f32 0.6931472, %v1604_v34  ;;  %vm990_vm7 = vcmp.lt.f32.partialorder %v989_v45, 0.0004427343 }
 0x221   : > { %v1048_v14 = vpack.c.bf16 %v1037_v15, %v1036_v41  ;;  %v994_v20 = vmul.f32 0.6931472, %v1606_v18  ;;  %v1005_v9 = vadd.f32 1.0, %v1004_v5  ;;  %vm847_vm8 = vcmp.gt.f32.partialorder %v2090_v36, 20.0 }
 0x222   : > { %v991_v2 = vsel %vm990_vm7, %v988_v58, %v985_v19  ;;  %v1007_v12 = vand.u32 2147483647, %v2208_v40  ;;  %v1022_v25 = vmul.f32 -0.5, %v2245_v17  ;;  %v1038_v28 = vsel %vm846_vm6, %v2078_v27, %v982_v37 }
 0x223   : > { %1451 = vmatprep.mubr.bf16.mxu0 %v1048_v14  ;;  %v1039_v30 = vsel %vm847_vm8, %v2090_v36, %v991_v2  ;;  %v997_v62 = vmul.f32 %v2195_v6, %v996_v59  ;;  %v1608_v29 = vpop.eup %1607  ;;  %vm999_vm9 = vcmp.lt.f32.partialorder %v998_v4, 0.0004427343  ;;  %v1014_v52 = vadd.f32 1.0, %v1013_v50 }
 0x224   : > { %v1049_v38 = vpack.c.bf16 %v1039_v30, %v1038_v28  ;;  %v1003_v33 = vmul.f32 0.6931472, %v1608_v29  ;;  %v1006_v10 = vmul.f32 %v2208_v40, %v1005_v9  ;;  %v1016_v35 = vand.u32 2147483647, %v2228_v11 }
 0x225   : > { %v1000_v44 = vsel %vm999_vm9, %v997_v62, %v994_v20  ;;  %vm1008_vm10 = vcmp.lt.f32.partialorder %v1007_v12, 0.0004427343  ;;  %v1023_v46 = vadd.f32 1.0, %v1022_v25  ;;  %vm848_vm11 = vcmp.gt.f32.partialorder %v2130_v48, 20.0 }
 0x226   : > { %v1610_v21 = vpop.eup %1609  ;;  %vm849_vm12 = vcmp.gt.f32.partialorder %v2143_v23, 20.0  ;;  %v1009_v27 = vsel %vm1008_vm10, %v1006_v10, %v1003_v33  ;;  %v1025_v36 = vand.u32 2147483647, %v2245_v17  ;;  %v1040_v6 = vsel %vm848_vm11, %v2130_v48, %v1000_v44 }
 0x227   : > { %1452 = vmatmul.mubr.bf16.gmra.mrb[24].mxu0 %v1049_v38  ;;  %v1041_v32 = vsel %vm849_vm12, %v2143_v23, %v1009_v27  ;;  %v1012_v42 = vmul.f32 0.6931472, %v1610_v21  ;;  %v1015_v40 = vmul.f32 %v2228_v11, %v1014_v52  ;;  %vm1017_vm13 = vcmp.lt.f32.partialorder %v1016_v35, 0.0004427343 }
 0x228   : > { %v1050_v54 = vpack.c.bf16 %v1041_v32, %v1040_v6  ;;  %v1024_v31 = vmul.f32 %v2245_v17, %v1023_v46  ;;  %vm1026_vm14 = vcmp.lt.f32.partialorder %v1025_v36, 0.0004427343  ;;  %vm850_vm15 = vcmp.gt.f32.partialorder %v2134_v7, 20.0 }
 0x229   : > { %v1612_v13 = vpop.eup %1611  ;;  %v1018_v61 = vsel %vm1017_vm13, %v1015_v40, %v1012_v42  ;;  %vm851_vm0 = vcmp.gt.f32.partialorder %v2151_v39, 20.0  ;;  %vm1220_vm1 = vcmask 130048  }
 0x22a   : > { %v1021_v49 = vmul.f32 0.6931472, %v1612_v13  ;;  %1455 = vmatprep.mubr.bf16.mxu0 %v1050_v54  ;;  %v1042_v23 = vsel %vm850_vm15, %v2134_v7, %v1018_v61 }
 0x22c   : > { %v1027_v48 = vsel %vm1026_vm14, %v1024_v31, %v1021_v49 }
 0x22d   : > { %v1043_v51 = vsel %vm851_vm0, %v2151_v39, %v1027_v48 }
 0x22e   : > { %v1051_v11 = vpack.c.bf16 %v1043_v51, %v1042_v23 }
 0x230   : > { %1456 = vmatmul.mubr.bf16.gmra.mrb[28].mxu0 %v1051_v11 }
 0x2e2   : > { %v1445_v17 = vpop.f32.mrb[16].mxu0 }
 0x2e3   : > { %v1166_v7 = vadd.f32 %v1445_v17, %v1322_v26  ;;  %v1157_v39 = vpop.f32.mrb[17].mxu0 }
 0x2e4   : > { %v1158_v43 = vadd.f32 %v1322_v26, %v1157_v39  ;;  %v1446_v16 = vpop.f32.mrb[18].mxu0 }
 0x2e5   : > { %1223 = vst.msk [vmem:[%s2307_s12 + $0x10] sm:$0xff] %vm1220_vm1, %v1166_v7  ;;  %v1169_v22 = vadd.f32 %v1446_v16, %v1322_v26  ;;  %v1160_v47 = vpop.f32.mrb[19].mxu0 }
 0x2e6   : > { %1221 = vst.msk [vmem:[%s2307_s12] sm:$0xff] %vm1220_vm1, %v1158_v43  ;;  %v1161_v53 = vadd.f32 %v1322_v26, %v1160_v47 }
 0x2e7   : > { %1224 = vst.msk [vmem:[%s2307_s12 + $0x18] sm:$0xff] %vm1220_vm1, %v1169_v22 }
 0x2e8   : > { %1222 = vst.msk [vmem:[%s2307_s12 + $0x8] sm:$0xff] %vm1220_vm1, %v1161_v53 }
 0x2f2   : > { %v1449_v45 = vpop.f32.mrb[20].mxu0 }
 0x2f3   : > { %v1182_v24 = vadd.f32 %v1449_v45, %v1322_v26  ;;  %v1173_v56 = vpop.f32.mrb[21].mxu0 }
 0x2f4   : > { %v1174_v60 = vadd.f32 %v1322_v26, %v1173_v56  ;;  %v1450_v0 = vpop.f32.mrb[22].mxu0 }
 0x2f5   : > { %1227 = vst.msk [vmem:[%s2307_s12 + $0x30] sm:$0xff] %vm1220_vm1, %v1182_v24  ;;  %v1185_v55 = vadd.f32 %v1450_v0, %v1322_v26  ;;  %v1176_v1 = vpop.f32.mrb[23].mxu0 }
 0x2f6   : > { %1225 = vst.msk [vmem:[%s2307_s12 + $0x20] sm:$0xff] %vm1220_vm1, %v1174_v60  ;;  %v1177_v3 = vadd.f32 %v1322_v26, %v1176_v1 }
 0x2f7   : > { %1228 = vst.msk [vmem:[%s2307_s12 + $0x38] sm:$0xff] %vm1220_vm1, %v1185_v55 }
 0x2f8   : > { %1226 = vst.msk [vmem:[%s2307_s12 + $0x28] sm:$0xff] %vm1220_vm1, %v1177_v3 }
 0x2fa   : > { %v1453_v5 = vpop.f32.mrb[24].mxu0 }
 0x2fb   : > { %v1198_v63 = vadd.f32 %v1453_v5, %v1322_v26  ;;  %v1189_v57 = vpop.f32.mrb[25].mxu0 }
 0x2fc   : > { %v1190_v8 = vadd.f32 %v1322_v26, %v1189_v57  ;;  %v1454_v58 = vpop.f32.mrb[26].mxu0 }
 0x2fd   : > { %1231 = vst.msk [vmem:[%s2307_s12 + $0x50] sm:$0xff] %vm1220_vm1, %v1198_v63  ;;  %v1201_v59 = vadd.f32 %v1454_v58, %v1322_v26  ;;  %v1192_v34 = vpop.f32.mrb[27].mxu0 }
 0x2fe   : > { %1229 = vst.msk [vmem:[%s2307_s12 + $0x40] sm:$0xff] %vm1220_vm1, %v1190_v8  ;;  %v1193_v41 = vadd.f32 %v1322_v26, %v1192_v34 }
 0x2ff   : > { %1232 = vst.msk [vmem:[%s2307_s12 + $0x58] sm:$0xff] %vm1220_vm1, %v1201_v59 }
 0x300   : > { %1230 = vst.msk [vmem:[%s2307_s12 + $0x48] sm:$0xff] %vm1220_vm1, %v1193_v41 }
 0x303   : > { %v1457_v15 = vpop.f32.mrb[28].mxu0 }
 0x304   : > { %v1214_v4 = vadd.f32 %v1457_v15, %v1322_v26  ;;  %v1205_v18 = vpop.f32.mrb[29].mxu0 }
 0x305   : > { %v1206_v14 = vadd.f32 %v1322_v26, %v1205_v18  ;;  %v1458_v37 = vpop.f32.mrb[30].mxu0 }
 0x306   : > { %1235 = vst.msk [vmem:[%s2307_s12 + $0x70] sm:$0xff] %vm1220_vm1, %v1214_v4  ;;  %v1217_v19 = vadd.f32 %v1458_v37, %v1322_v26  ;;  %v1208_v50 = vpop.f32.mrb[31].mxu0 }
 0x307   : > { %1233 = vst.msk [vmem:[%s2307_s12 + $0x60] sm:$0xff] %vm1220_vm1, %v1206_v14  ;;  %v1209_v20 = vadd.f32 %v1322_v26, %v1208_v50 }
 0x308   : > { %1236 = vst.msk [vmem:[%s2307_s12 + $0x78] sm:$0xff] %vm1220_vm1, %v1217_v19 }
 0x309   : > { %1234 = vst.msk [vmem:[%s2307_s12 + $0x68] sm:$0xff] %vm1220_vm1, %v1209_v20 }
 0x30a PF: > { %s17_s24 = sadd.s32 1, %s1619_s24  }
 0x30b   : > { %p14_p4 = scmp.ge.s32.totalorder %s17_s24, 4  }
 0x30d   :  { %16 = sbr.rel (!%p14_p4) target bundleno = 1 (0x1), region = 78 }

</bundles_post_ra>
